<compile_context>
chip_gen: v7x
topology: tpu7x:2x2x1
jax: 0.10.0
libtpu: 0.0.40
codegen_flags: <defaults>
</compile_context>

<pallas_src>
import functools

import jax
import jax.numpy as jnp
from jax import lax
from jax.experimental import pallas as pl
from jax.experimental.pallas import tpu as pltpu


# --------------------------------------------------------------------------
# sizing helpers
# --------------------------------------------------------------------------

def _round_up(x, m):
    return ((x + m - 1) // m) * m


def _sublane_quantum(dtype):
    # f32 -> 8 rows per vreg tile, bf16 -> 16, int8/fp8 -> 32
    return max(8, 32 // jnp.dtype(dtype).itemsize)


def _device_kind():
    try:
        return jax.devices()[0].device_kind.lower()
    except Exception:
        return ""


def _default_target_block_bytes():
    kind = _device_kind()
    if "v7" in kind:
        return 4 << 20   # faster HBM: bigger blocks amortize per-step overhead
    if "v6" in kind:
        return 2 << 20   # 1-2 MiB is the measured roofline knee
    return 1 << 20       # v5e (and unknown): most deeply mem-bound, 1 MiB is enough


def _compiler_params(dim_semantics, footprint_bytes):
    """Only raise vmem_limit_bytes when the padded footprint needs it."""
    kind = _device_kind()
    if "v6" in kind or "v7" in kind:
        scoped_default = 32 << 20
    else:                       # v5e or unknown: be conservative
        scoped_default = 16 << 20
    physical = (64 << 20) if "v7" in kind else (128 << 20)

    kwargs = {}
    if footprint_bytes > scoped_default - (2 << 20):
        kwargs["vmem_limit_bytes"] = int(
            min(footprint_bytes + (8 << 20), physical - (16 << 20)))
    return pltpu.CompilerParams(dimension_semantics=dim_semantics, **kwargs)


def _choose_tile_hw(hw, padded_c, itemsize, target_block_bytes):
    # aim ~target_block_bytes per *padded* input block (padded_c * tile_hw * itemsize)
    want = max(128, target_block_bytes // max(1, padded_c * itemsize))
    if hw <= want:
        return hw                            # full extent: always a legal block dim
    return max(128, (want // 128) * 128)     # lane quantum


def _choose_hw_outer(n, n_tiles):
    # Second parallel grid axis so v7x's two TensorCores stay balanced when the
    # batch axis alone cannot (N == 1 or odd).  No-op on single-TC chips.
    if n_tiles >= 2 and n_tiles % 2 == 0 and n % 2 != 0:
        return 2
    return 1


# --------------------------------------------------------------------------
# kernels
# --------------------------------------------------------------------------

def _xent_rows_kernel(x_ref, t_ref, o_ref, *, n_rows, ragged_n):
    """Small-HW path: block (bn, C, HW); one output row of per-lane losses per batch row."""
    x = x_ref[...].astype(jnp.float32)             # (bn, C, HW)
    t = t_ref[...].astype(jnp.float32)

    m = jnp.max(x, axis=1, keepdims=True)          # (bn, 1, HW)
    z = x - m
    lse = jnp.log(jnp.sum(jnp.exp(z), axis=1))     # (bn, HW)
    sum_t = jnp.sum(t, axis=1)                     # (bn, HW)
    sum_tz = jnp.sum(t * z, axis=1)                # (bn, HW)
    loss = lse * sum_t - sum_tz                    # -sum_c t * log softmax, per lane

    if ragged_n:  # trace-time flag: mask batch rows past N (OOB block read)
        bn, hw = loss.shape
        row = pl.program_id(0) * bn + lax.broadcasted_iota(jnp.int32, (bn, hw), 0)
        loss = jnp.where(row < n_rows, loss, 0.0)

    o_ref[...] = loss[None]                        # (1, bn, HW)


def _xent_tiled_kernel(x_ref, t_ref, o_ref, *, hw, tile_hw, n_tiles, ragged, use_mxu):
    """Large-HW path: block (1, C, tile_hw); accumulate per-lane losses over hw_inner."""
    j = pl.program_id(2)

    @pl.when(j == 0)
    def _():
        o_ref[...] = jnp.zeros_like(o_ref)

    x = x_ref[0].astype(jnp.float32)               # (C, tile_hw)
    t = t_ref[0].astype(jnp.float32)

    m = jnp.max(x, axis=0, keepdims=True)          # (1, tile_hw)
    z = x - m
    if use_mxu:
        # Large C: run the O(C) channel reductions on the otherwise-idle MXU.
        ones = jnp.ones((1, x.shape[0]), jnp.float32)
        lse = jnp.log(jnp.dot(ones, jnp.exp(z), preferred_element_type=jnp.float32))
        sum_t = jnp.dot(ones, t, preferred_element_type=jnp.float32)
        sum_tz = jnp.dot(ones, t * z, preferred_element_type=jnp.float32)
    else:
        lse = jnp.log(jnp.sum(jnp.exp(z), axis=0, keepdims=True))
        sum_t = jnp.sum(t, axis=0, keepdims=True)
        sum_tz = jnp.sum(t * z, axis=0, keepdims=True)
    loss_col = lse * sum_t - sum_tz                # (1, tile_hw)

    if ragged:
        # Only the globally-last spatial tile pays for the tail mask.
        is_last = jnp.logical_and(pl.program_id(1) == pl.num_programs(1) - 1,
                                  j == pl.num_programs(2) - 1)

        @pl.when(is_last)
        def _():
            col = (n_tiles - 1) * tile_hw + lax.broadcasted_iota(
                jnp.int32, (1, tile_hw), 1)
            o_ref[...] += jnp.where(col < hw, loss_col, 0.0)

        @pl.when(jnp.logical_not(is_last))
        def _():
            o_ref[...] += loss_col
    else:
        o_ref[...] += loss_col


# --------------------------------------------------------------------------
# wrapper
# --------------------------------------------------------------------------

def softmax_cross_entropy_loss(logits_nchw, target_nchw, *, tile_hw=None,
                               batch_block=None, target_block_bytes=None):
    if logits_nchw.shape != target_nchw.shape:
        raise ValueError(
            "Target size ({}) must be the same as input size ({})".format(
                target_nchw.shape, logits_nchw.shape))
    n, c, h, w = logits_nchw.shape
    hw = h * w

    # Free layout view: NCHW -> (N, C, H*W). No transpose, no pad.
    x = logits_nchw.reshape(n, c, hw)
    t = target_nchw.reshape(n, c, hw)

    itemsize = jnp.dtype(x.dtype).itemsize
    if target_block_bytes is None:
        target_block_bytes = _default_target_block_bytes()

    # sublane/lane-padded footprint of one (1, C, HW) input block in VMEM
    padded_c = _round_up(c, _sublane_quantum(x.dtype))
    lane_hw = _round_up(hw, 128)
    row_bytes = padded_c * lane_hw * itemsize

    use_rows_path = (tile_hw is None) and (batch_block is not None
                                           or row_bytes <= target_block_bytes)

    if use_rows_path:
        # ---- rows path: fold batch rows into each block, grid (N / bn,) ----
        if batch_block is not None:
            bn = int(batch_block)
        else:
            bn = target_block_bytes // row_bytes
        bn = max(1, min(bn, n))
        grid_n = pl.cdiv(n, bn)
        ragged_n = (n % bn) != 0

        footprint = (2 * 2 * bn * row_bytes                      # 2 inputs x 2 buffers
                     + 2 * _round_up(bn, 8) * lane_hw * 4)        # f32 output blocks

        kernel = functools.partial(_xent_rows_kernel, n_rows=n, ragged_n=ragged_n)

        out = pl.pallas_call(
            kernel,
            out_shape=jax.ShapeDtypeStruct((grid_n, bn, hw), jnp.float32),
            grid_spec=pltpu.PrefetchScalarGridSpec(
                num_scalar_prefetch=0,
                grid=(grid_n,),
                in_specs=[
                    pl.BlockSpec((bn, c, hw), lambda i: (i, 0, 0)),
                    pl.BlockSpec((bn, c, hw), lambda i: (i, 0, 0)),
                ],
                out_specs=pl.BlockSpec((1, bn, hw), lambda i: (i, 0, 0)),
            ),
            compiler_params=_compiler_params(("parallel",), footprint),
        )(x, t)
        return jnp.sum(out)

    # ---- tiled spatial path: grid (N, hw_outer, hw_inner) ----
    if tile_hw is None:
        tile_hw = _choose_tile_hw(hw, padded_c, itemsize, target_block_bytes)
    else:
        tile_hw = min(int(tile_hw), hw)
        if tile_hw < hw:
            tile_hw = max(128, (tile_hw // 128) * 128)

    n_tiles = pl.cdiv(hw, tile_hw)
    ragged = (hw % tile_hw) != 0
    hw_outer = _choose_hw_outer(n, n_tiles)
    hw_inner = n_tiles // hw_outer

    block_bytes = padded_c * _round_up(tile_hw, 128) * itemsize
    footprint = 2 * 2 * block_bytes + 2 * 8 * _round_up(tile_hw, 128) * 4

    kernel = functools.partial(_xent_tiled_kernel, hw=hw, tile_hw=tile_hw,
                               n_tiles=n_tiles, ragged=ragged,
                               use_mxu=(c >= 64))

    out = pl.pallas_call(
        kernel,
        out_shape=jax.ShapeDtypeStruct((n * hw_outer, tile_hw), jnp.float32),
        grid_spec=pltpu.PrefetchScalarGridSpec(
            num_scalar_prefetch=0,
            grid=(n, hw_outer, hw_inner),
            in_specs=[
                pl.BlockSpec((1, c, tile_hw),
                             lambda i, o, j: (i, 0, o * hw_inner + j)),
                pl.BlockSpec((1, c, tile_hw),
                             lambda i, o, j: (i, 0, o * hw_inner + j)),
            ],
            out_specs=pl.BlockSpec((1, tile_hw),
                                   lambda i, o, j: (i * hw_outer + o, 0)),
        ),
        compiler_params=_compiler_params(
            ("parallel", "parallel", "arbitrary"), footprint),
    )(x, t)

    # single cheap cross-lane reduce of the per-(n, hw_outer, lane) partial sums
    return jnp.sum(out)


def _reference(logits_nchw, target_nchw):
    p = jax.nn.softmax(logits_nchw, axis=1)
    return jnp.sum(-target_nchw * jnp.log(p))


if __name__ == "__main__":
    key = jax.random.PRNGKey(0)
    k1, k2, k3, k4, k5, k6 = jax.random.split(key, 6)

    # 1) Primary shape: rows path (batch rows folded into one block).
    N, C, H, W = 2, 4, 16, 16
    logits = jax.random.normal(k1, (N, C, H, W), dtype=jnp.float32)
    target = jax.nn.softmax(
        jax.random.normal(k2, (N, C, H, W), dtype=jnp.float32), axis=1)
    loss = softmax_cross_entropy_loss(logits, target)
    jax.block_until_ready(loss)
    ref = _reference(logits, target)
    assert jnp.allclose(loss, ref, rtol=1e-5, atol=1e-5), (loss, ref)

    # 2) Force the spatially tiled path (odd N -> hw_outer megacore split,
    #    ragged spatial tail gated with pl.when).
    logits2 = jax.random.normal(k3, (3, 4, 10, 20), dtype=jnp.float32)
    target2 = jax.nn.softmax(
        jax.random.normal(k4, (3, 4, 10, 20), dtype=jnp.float32), axis=1)
    loss2 = softmax_cross_entropy_loss(logits2, target2, tile_hw=128)
    jax.block_until_ready(loss2)
    ref2 = _reference(logits2, target2)
    assert jnp.allclose(loss2, ref2, rtol=1e-5, atol=1e-5), (loss2, ref2)

    # 3) Rows path with a ragged batch tail (N=3, bn=2).
    logits3 = jax.random.normal(k5, (3, 4, 8, 8), dtype=jnp.float32)
    target3 = jax.nn.softmax(
        jax.random.normal(k6, (3, 4, 8, 8), dtype=jnp.float32), axis=1)
    loss3 = softmax_cross_entropy_loss(logits3, target3, batch_block=2)
    jax.block_until_ready(loss3)
    ref3 = _reference(logits3, target3)
    assert jnp.allclose(loss3, ref3, rtol=1e-5, atol=1e-5), (loss3, ref3)

    print("KERNEL_OK")
</pallas_src>

<mosaic_0001>
module attributes {stable_mosaic.version = 11 : i64} {
  func.func @_xent_rows_kernel(%arg0: i32, %arg1: memref<2x4x256xf32, #tpu.memory_space<vmem>>, %arg2: memref<2x4x256xf32, #tpu.memory_space<vmem>>, %arg3: memref<1x2x256xf32, #tpu.memory_space<vmem>>) attributes {dimension_semantics = [#tpu.dimension_semantics<parallel>], iteration_bounds = array<i64: 1>, scalar_prefetch = 0 : i64, scratch_operands = 0 : i64, tpu.core_type = #tpu.core_type<tc>, window_params = [{transform_indices = @transform_0, window_bounds = array<i64: 2, 4, 256>}, {transform_indices = @transform_1, window_bounds = array<i64: 2, 4, 256>}, {transform_indices = @transform_2, window_bounds = array<i64: 1, 2, 256>}]} {
    %c0 = arith.constant 0 : index
    %c0_0 = arith.constant 0 : index
    %c0_1 = arith.constant 0 : index
    %0 = vector.load %arg1[%c0, %c0_0, %c0_1] : memref<2x4x256xf32, #tpu.memory_space<vmem>>, vector<2x4x256xf32>
    %c0_2 = arith.constant 0 : index
    %c0_3 = arith.constant 0 : index
    %c0_4 = arith.constant 0 : index
    %1 = vector.load %arg2[%c0_2, %c0_3, %c0_4] : memref<2x4x256xf32, #tpu.memory_space<vmem>>, vector<2x4x256xf32>
    %cst = arith.constant dense<0xFF800000> : vector<2x256xf32>
    %2 = vector.multi_reduction <maximumf>, %0, %cst [1] : vector<2x4x256xf32> to vector<2x256xf32>
    %3 = vector.shape_cast %2 : vector<2x256xf32> to vector<2x1x256xf32>
    %4 = vector.broadcast %3 : vector<2x1x256xf32> to vector<2x4x256xf32>
    %5 = arith.subf %0, %4 : vector<2x4x256xf32>
    %6 = math.exp %5 : vector<2x4x256xf32>
    %cst_5 = arith.constant dense<0.000000e+00> : vector<2x256xf32>
    %7 = vector.multi_reduction <add>, %6, %cst_5 [1] : vector<2x4x256xf32> to vector<2x256xf32>
    %8 = math.log %7 : vector<2x256xf32>
    %cst_6 = arith.constant dense<0.000000e+00> : vector<2x256xf32>
    %9 = vector.multi_reduction <add>, %1, %cst_6 [1] : vector<2x4x256xf32> to vector<2x256xf32>
    %10 = arith.mulf %1, %5 : vector<2x4x256xf32>
    %cst_7 = arith.constant dense<0.000000e+00> : vector<2x256xf32>
    %11 = vector.multi_reduction <add>, %10, %cst_7 [1] : vector<2x4x256xf32> to vector<2x256xf32>
    %12 = arith.mulf %8, %9 : vector<2x256xf32>
    %13 = arith.subf %12, %11 : vector<2x256xf32>
    %14 = vector.shape_cast %13 : vector<2x256xf32> to vector<1x2x256xf32>
    %c0_8 = arith.constant 0 : index
    %c0_9 = arith.constant 0 : index
    %c0_10 = arith.constant 0 : index
    %15 = vector.load %arg3[%c0_8, %c0_9, %c0_10] : memref<1x2x256xf32, #tpu.memory_space<vmem>>, vector<1x2x256xf32>
    tpu.vector_store %arg3[%c0_8, %c0_9, %c0_10], %14 {strides = array<i32>} : memref<1x2x256xf32, #tpu.memory_space<vmem>>, vector<1x2x256xf32>,
    return
  }
  func.func @transform_0(%arg0: i32) -> (i32, i32, i32) {
    %c0_i32 = arith.constant 0 : i32
    %c0_i32_0 = arith.constant 0 : i32
    %c0_i32_1 = arith.constant 0 : i32
    return %arg0, %c0_i32, %c0_i32_0 : i32, i32, i32
  }
  func.func @transform_1(%arg0: i32) -> (i32, i32, i32) {
    %c0_i32 = arith.constant 0 : i32
    %c0_i32_0 = arith.constant 0 : i32
    %c0_i32_1 = arith.constant 0 : i32
    return %arg0, %c0_i32, %c0_i32_0 : i32, i32, i32
  }
  func.func @transform_2(%arg0: i32) -> (i32, i32, i32) {
    %c0_i32 = arith.constant 0 : i32
    %c0_i32_0 = arith.constant 0 : i32
    %c0_i32_1 = arith.constant 0 : i32
    return %arg0, %c0_i32, %c0_i32_0 : i32, i32, i32
  }
}

</mosaic_0001>

<bundles_post_ra>
// kernel: tpu_custom_call.1
= control target key start
LH: loop header
LB: loop body
LE: loop exit
PB: predicated region body
PF: predicated region fallthrough
CT: control target
= control target key end

     0   :  { %7 = vsyncpa [#allocation3], 0  ;;  %s431_s0 = inlined_call_operand.hbm [shape: f32[2,4,256], index: 0, kind: input, shape index: {}]   ;;  %s432_s1 = inlined_call_operand.hbm [shape: f32[2,4,256], index: 1, kind: input, shape index: {}]   ;;  %s433_s2 = inlined_call_operand.hbm [shape: f32[1,2,256], index: 2, kind: output, shape index: {}]  }
   0x1   :  { %8 = vsyncpa [#allocation6], 0 }
   0x2   :  { %9 = vsyncpa [#allocation4], 0  ;;  %s358_s9 = smov [#allocation2]   ;;  %s286_s13 = scalar_lea.hbm %s431_s0, 256 }
   0x3   :  { %s15_s10 = sshll.u32 %s358_s9, 4  ;;  %p287_p0 = scmp.ne.s32.totalorder %s431_s0, %s286_s13  ;;  %s16_s10 = int_to_ptr.vmem [resolvable:$true] %s15_s10 }
   0x4   :  { %p290_p1 = scmp.lt.u32.totalorder %s286_s13, %s431_s0 }
   0x6   :  { %p292_p2 = pnand %p290_p1, %p287_p0 }
   0x8   :  { %295 = shalt.err (!%p292_p2)
}
   0x9   :  { %s296_s18 = scalar_lea.vmem %s16_s10, 256  ;;  %p301_p4 = scmp.lt.s32.totalorder %s16_s10, %s16_s10 }
   0xa   :  { %p297_p3 = scmp.ne.s32.totalorder %s16_s10, %s296_s18  ;;  %p302_p5 = scmp.lt.s32.totalorder %s296_s18, %s296_s18 }
   0xc   :  { %p303_p6 = por %p302_p5, %p301_p4 }
   0xe   :  { %p304_p7 = pnand %p303_p6, %p297_p3 }
  0x10   :  { %307 = shalt.err (!%p304_p7)
}
  0x11   :  { %s359_s19 = smov 128   ;;  %s360_s20 = smov 8  }
  0x12   :  { %21 = dma.hbm_to_vmem [thread:$0]  %s431_s0, 256, %s16_s10, [#allocation3], %s359_s19, %s359_s19, %s360_s20  }
  0x13   :  { %s361_s23 = smov [#allocation5]   ;;  %s308_s27 = scalar_lea.hbm %s432_s1, 256 }
  0x14   :  { %s27_s24 = sshll.u32 %s361_s23, 4  ;;  %p309_p8 = scmp.ne.s32.totalorder %s432_s1, %s308_s27  ;;  %s28_s24 = int_to_ptr.vmem [resolvable:$true] %s27_s24 }
  0x15   :  { %p312_p9 = scmp.lt.u32.totalorder %s308_s27, %s432_s1 }
  0x17   :  { %p314_p10 = pnand %p312_p9, %p309_p8 }
  0x19   :  { %317 = shalt.err (!%p314_p10)
}
  0x1a   :  { %s318_s4 = scalar_lea.vmem %s28_s24, 256  ;;  %p323_p12 = scmp.lt.s32.totalorder %s28_s24, %s28_s24 }
  0x1b   :  { %p319_p11 = scmp.ne.s32.totalorder %s28_s24, %s318_s4  ;;  %p324_p13 = scmp.lt.s32.totalorder %s318_s4, %s318_s4 }
  0x1d   :  { %p325_p0 = por %p324_p13, %p323_p12 }
  0x1f   :  { %p326_p1 = pnand %p325_p0, %p319_p11 }
  0x21   :  { %329 = shalt.err (!%p326_p1)
}
  0x22   :  { %33 = dma.hbm_to_vmem [thread:$0]  %s432_s1, 256, %s28_s24, [#allocation6], %s359_s19, %s359_s19, %s360_s20  }
  0x23   :  { %352 = dma.done.wait [#allocation3], 256  }
  0x24   :  { %353 = vsyncadd [#allocation3], 4294967040 }
  0x25   :  { %354 = dma.done.wait [#allocation6], 256  }
  0x26   :  { %355 = vsyncadd [#allocation6], 4294967040  ;;  %vm50_vm0 = vcmask 1043456   ;;  %v40_v0 = vld [vmem:[#allocation2] sm:$0xff]  ;;  %v41_v1 = vld [vmem:[#allocation2 + $0x8] sm:$0xff]  ;;  %vm238_vm1 = vcmask 1041409  }
  0x27   :  { %v46_v2 = vcombine.high %v40_v0, %v40_v0  ;;  %v47_v3 = vcombine.high %v41_v1, %v41_v1  ;;  %v51_v4 = vsel %vm50_vm0, %v40_v0, -inf  ;;  %v65_v5 = vsel %vm50_vm0, %v41_v1, -inf  ;;  %v42_v38 = vld [vmem:[#allocation5] sm:$0xff]  ;;  %v43_v39 = vld [vmem:[#allocation5 + $0x8] sm:$0xff]  ;;  %s363_s1 = smov [#allocation7]  }
  0x28   :  { %v52_v6 = vrot.slane %v51_v4, 4  ;;  %v66_v7 = vrot.slane %v65_v5, 4  ;;  %v137_v40 = vcombine.high %v42_v38, %v42_v38  ;;  %v138_v42 = vcombine.high %v43_v39, %v43_v39  ;;  %s254_s6 = sshll.u32 %s363_s1, 4  ;;  %s255_s6 = int_to_ptr.vmem [resolvable:$true] %s254_s6 }
  0x29   :  { %v58_v8 = vsel %vm50_vm0, %v46_v2, -inf  ;;  %v72_v9 = vsel %vm50_vm0, %v47_v3, -inf  ;;  %v141_v43 = vsel %vm50_vm0, %v42_v38, 0.0  ;;  %v155_v44 = vsel %vm50_vm0, %v43_v39, 0.0  ;;  %s330_s7 = scalar_lea.vmem %s255_s6, 64  ;;  %p335_p3 = scmp.lt.s32.totalorder %s255_s6, %s255_s6 }
  0x2a   :  { %v53_v10 = vmax.f32 %v51_v4, %v52_v6  ;;  %v59_v11 = vrot.slane %v58_v8, 4  ;;  %v67_v12 = vmax.f32 %v65_v5, %v66_v7  ;;  %v73_v13 = vrot.slane %v72_v9, 4  ;;  %p331_p2 = scmp.ne.s32.totalorder %s255_s6, %s330_s7  ;;  %p336_p4 = scmp.lt.s32.totalorder %s330_s7, %s330_s7 }
  0x2b   :  { %v142_v47 = vrot.slane %v141_v43, 4  ;;  %v148_v48 = vsel %vm50_vm0, %v137_v40, 0.0  ;;  %v156_v49 = vrot.slane %v155_v44, 4  ;;  %v162_v54 = vsel %vm50_vm0, %v138_v42, 0.0 }
  0x2c   :  { %v54_v14 = vrot.slane %v53_v10, 2  ;;  %v60_v15 = vmax.f32 %v58_v8, %v59_v11  ;;  %v68_v16 = vrot.slane %v67_v12, 2  ;;  %v74_v17 = vmax.f32 %v72_v9, %v73_v13  ;;  %p337_p5 = por %p336_p4, %p335_p3 }
  0x2d   :  { %v149_v62 = vrot.slane %v148_v48, 4  ;;  %vm240_vm2 = vcmask 1043459   ;;  %vm242_vm3 = vcmask 1045509   ;;  %vm244_vm4 = vcmask 1047559  }
  0x2e   :  { %v55_v18 = vmax.f32 %v53_v10, %v54_v14  ;;  %v61_v19 = vrot.slane %v60_v15, 2  ;;  %v69_v20 = vmax.f32 %v67_v12, %v68_v16  ;;  %v75_v21 = vrot.slane %v74_v17, 2  ;;  %p338_p6 = pnand %p337_p5, %p331_p2 }
  0x2f   :  { %v163_v10 = vrot.slane %v162_v54, 4  ;;  %v143_v14 = vadd.f32 %v142_v47, %v141_v43 }
  0x30   :  { %v56_v22 = vrot.slane %v55_v18, 1  ;;  %v62_v23 = vmax.f32 %v60_v15, %v61_v19  ;;  %v70_v24 = vrot.slane %v69_v20, 1  ;;  %v76_v25 = vmax.f32 %v74_v17, %v75_v21 }
  0x32   :  { %v57_v26 = vmax.f32 %v55_v18, %v56_v22  ;;  %v63_v27 = vrot.slane %v62_v23, 1  ;;  %v71_v28 = vmax.f32 %v69_v20, %v70_v24  ;;  %v77_v29 = vrot.slane %v76_v25, 1 }
  0x33   :  { %v157_v18 = vadd.f32 %v156_v49, %v155_v44  ;;  %v150_v22 = vadd.f32 %v149_v62, %v148_v48  ;;  %v221_v62 = vlaneseq }
  0x34   :  { %v64_v30 = vmax.f32 %v62_v23, %v63_v27  ;;  %v78_v31 = vmax.f32 %v76_v25, %v77_v29 }
  0x36   :  { %v83_v32 = vcombine.low %v57_v26, %v64_v30  ;;  %v84_v33 = vcombine.low %v71_v28, %v78_v31  ;;  %v164_v26 = vadd.f32 %v163_v10, %v162_v54  ;;  %v144_v30 = vrot.slane %v143_v14, 2 }
  0x38   :  { %v87_v34 = vsub.f32 %v40_v0, %v83_v32  ;;  %v88_v35 = vsub.f32 %v41_v1, %v84_v33  ;;  %v145_v44 = vadd.f32 %v144_v30, %v143_v14 }
  0x3a   :  { %v89_v36 = vmul.f32 1.442695, %v87_v34  ;;  %v91_v37 = vmul.f32 1.442695, %v88_v35  ;;  %v169_v41 = vmul.f32 %v87_v34, %v42_v38  ;;  %v170_v45 = vmul.f32 %v88_v35, %v43_v39 }
  0x3b   :  { %v158_v34 = vrot.slane %v157_v18, 2  ;;  %v151_v38 = vrot.slane %v150_v22, 2 }
  0x3c   :  { %274 = vpow2.f32 %v89_v36  ;;  %v173_v50 = vcombine.high %v169_v41, %v169_v41  ;;  %v174_v55 = vcombine.high %v170_v45, %v170_v45  ;;  %v177_v59 = vsel %vm50_vm0, %v169_v41, 0.0 }
  0x3d   :  { %276 = vpow2.f32 %v91_v37  ;;  %v191_v63 = vsel %vm50_vm0, %v170_v45, 0.0  ;;  %v178_v6 = vrot.slane %v177_v59, 4  ;;  %v165_v41 = vrot.slane %v164_v26, 2 }
  0x3e   :  { %v184_v3 = vsel %vm50_vm0, %v173_v50, 0.0  ;;  %v198_v7 = vsel %vm50_vm0, %v174_v55, 0.0  ;;  %v192_v11 = vrot.slane %v191_v63, 4  ;;  %v152_v48 = vadd.f32 %v151_v38, %v150_v22 }
  0x3f   :  { %v185_v15 = vrot.slane %v184_v3, 4  ;;  %v199_v19 = vrot.slane %v198_v7, 4  ;;  %v179_v23 = vadd.f32 %v178_v6, %v177_v59  ;;  %v166_v50 = vadd.f32 %v165_v41, %v164_v26 }
  0x40   :  { %v193_v27 = vadd.f32 %v192_v11, %v191_v63 }
  0x41   :  { %v186_v31 = vadd.f32 %v185_v15, %v184_v3  ;;  %v200_v35 = vadd.f32 %v199_v19, %v198_v7  ;;  %v180_v39 = vrot.slane %v179_v23, 2 }
  0x42   :  { %v194_v42 = vrot.slane %v193_v27, 2 }
  0x43   :  { %v187_v45 = vrot.slane %v186_v31, 2  ;;  %v201_v47 = vrot.slane %v200_v35, 2  ;;  %v181_v49 = vadd.f32 %v180_v39, %v179_v23 }
  0x45   :  { %v202_v55 = vadd.f32 %v201_v47, %v200_v35 }
  0x46   :  { %v275_v46 = vpop.eup %274 }
  0x47   :  { %v277_v51 = vpop.eup %276  ;;  %v95_v52 = vcombine.high %v275_v46, %v275_v46  ;;  %v99_v53 = vsel %vm50_vm0, %v275_v46, 0.0  ;;  %v159_v46 = vadd.f32 %v158_v34, %v157_v18 }
  0x48   :  { %v96_v56 = vcombine.high %v277_v51, %v277_v51  ;;  %v100_v57 = vrot.slane %v99_v53, 4  ;;  %v113_v58 = vsel %vm50_vm0, %v277_v51, 0.0  ;;  %v195_v51 = vadd.f32 %v194_v42, %v193_v27 }
  0x49   :  { %v106_v60 = vsel %vm50_vm0, %v95_v52, 0.0  ;;  %v114_v61 = vrot.slane %v113_v58, 4  ;;  %v146_v52 = vrot.slane %v145_v44, 1  ;;  %v160_v54 = vrot.slane %v159_v46, 1 }
  0x4a   :  { %v101_v0 = vadd.f32 %v100_v57, %v99_v53  ;;  %v107_v1 = vrot.slane %v106_v60, 4  ;;  %v120_v2 = vsel %vm50_vm0, %v96_v56, 0.0  ;;  %v188_v53 = vadd.f32 %v187_v45, %v186_v31 }
  0x4b   :  { %v115_v4 = vadd.f32 %v114_v61, %v113_v58  ;;  %v121_v5 = vrot.slane %v120_v2, 4  ;;  %v153_v56 = vrot.slane %v152_v48, 1  ;;  %v182_v57 = vrot.slane %v181_v49, 1 }
  0x4c   :  { %v102_v8 = vrot.slane %v101_v0, 2  ;;  %v108_v9 = vadd.f32 %v107_v1, %v106_v60  ;;  %v167_v58 = vrot.slane %v166_v50, 1  ;;  %v196_v59 = vrot.slane %v195_v51, 1 }
  0x4d   :  { %v116_v12 = vrot.slane %v115_v4, 2  ;;  %v122_v13 = vadd.f32 %v121_v5, %v120_v2  ;;  %v147_v60 = vadd.f32 %v146_v52, %v145_v44  ;;  %v189_v61 = vrot.slane %v188_v53, 1 }
  0x4e   :  { %v103_v16 = vadd.f32 %v102_v8, %v101_v0  ;;  %v109_v17 = vrot.slane %v108_v9, 2  ;;  %v161_v0 = vadd.f32 %v160_v54, %v159_v46  ;;  %v203_v1 = vrot.slane %v202_v55, 1 }
  0x4f   :  { %v117_v20 = vadd.f32 %v116_v12, %v115_v4  ;;  %v123_v21 = vrot.slane %v122_v13, 2  ;;  %v362_v2 = vmov 1983009808   ;;  %v154_v6 = vadd.f32 %v153_v56, %v152_v48 }
  0x50   :  { %v104_v24 = vrot.slane %v103_v16, 1  ;;  %v110_v25 = vadd.f32 %v109_v17, %v108_v9  ;;  %v219_v3 = vunpack.c.l.s4 %v362_v2  ;;  %v183_v7 = vadd.f32 %v182_v57, %v181_v49 }
  0x51   :  { %v118_v28 = vrot.slane %v117_v20, 1  ;;  %v124_v29 = vadd.f32 %v123_v21, %v122_v13  ;;  %v168_v10 = vadd.f32 %v167_v58, %v166_v50  ;;  %v197_v11 = vadd.f32 %v196_v59, %v195_v51 }
  0x52   :  { %v105_v32 = vadd.f32 %v104_v24, %v103_v16  ;;  %v111_v33 = vrot.slane %v110_v25, 1  ;;  %v190_v14 = vadd.f32 %v189_v61, %v188_v53  ;;  %v222_v16 = vshrl.u32 %v221_v62, 7 }
  0x53   :  { %v119_v36 = vadd.f32 %v118_v28, %v117_v20  ;;  %v125_v37 = vrot.slane %v124_v29, 1  ;;  %v204_v18 = vadd.f32 %v203_v1, %v202_v55  ;;  %v220_v20 = vunpack.c.0.s8 %v219_v3 }
  0x54   :  { %v112_v40 = vadd.f32 %v111_v33, %v110_v25  ;;  %278 = vlog2.f32 %v105_v32 }
  0x55   :  { %v126_v43 = vadd.f32 %v125_v37, %v124_v29  ;;  %280 = vlog2.f32 %v119_v36  ;;  %v223_v27 = vsub.s32 %v220_v20, %v222_v16 }
  0x56   :  { %282 = vlog2.f32 %v112_v40 }
  0x57   :  { %284 = vlog2.f32 %v126_v43 }
  0x5e   :  { %v279_v63 = vpop.eup %278 }
  0x5f   :  { %v281_v4 = vpop.eup %280  ;;  %v128_v5 = vmul.f32 0.6931472, %v279_v63 }
  0x60   :  { %v283_v8 = vpop.eup %282  ;;  %v132_v9 = vmul.f32 0.6931472, %v281_v4 }
  0x61   :  { %v285_v12 = vpop.eup %284  ;;  %v130_v13 = vmul.f32 0.6931472, %v283_v8  ;;  %v205_v15 = vmul.f32 %v147_v60, %v128_v5 }
  0x62   :  { %v134_v17 = vmul.f32 0.6931472, %v285_v12  ;;  %v207_v19 = vmul.f32 %v161_v0, %v132_v9 }
  0x63   :  { %v206_v21 = vmul.f32 %v154_v6, %v130_v13  ;;  %v209_v22 = vsub.f32 %v205_v15, %v183_v7 }
  0x64   :  { %v208_v23 = vmul.f32 %v168_v10, %v134_v17  ;;  %v211_v24 = vsub.f32 %v207_v19, %v197_v11 }
  0x65   :  { %v210_v25 = vsub.f32 %v206_v21, %v190_v14 }
  0x66   :  { %v212_v26 = vsub.f32 %v208_v23, %v204_v18 }
  0x67   :  { %v217_v28 = vcombine.low %v209_v22, %v210_v25 }
  0x68   :  { %v225_v29 = vcombine.low %v211_v24, %v212_v26 }
  0x69   :  { %v224_v30 = vrot.slane %v217_v28, %v223_v27 }
  0x6a   :  { %v232_v31 = vrot.slane %v225_v29, %v223_v27 }
  0x6c   :  { %v237_v32 = vrot.slane %v232_v31, 7 }
  0x6e   :  { %v239_v33 = vsel %vm238_vm1, %v237_v32, %v224_v30 }
  0x6f   :  { %v241_v34 = vsel %vm240_vm2, %v237_v32, %v239_v33 }
  0x70   :  { %v243_v35 = vsel %vm242_vm3, %v237_v32, %v241_v34 }
  0x71   :  { %v245_v36 = vsel %vm244_vm4, %v237_v32, %v243_v35 }
  0x72   :  { %247 = vst [vmem:[#allocation7] sm:$0xf] %v245_v36 }
  0x73   :  { %341 = shalt.err (!%p338_p6)
}
  0x74   :  { %s342_s10 = scalar_lea.hbm %s433_s2, 64 }
  0x75   :  { %p343_p7 = scmp.ne.s32.totalorder %s433_s2, %s342_s10  ;;  %p346_p8 = scmp.lt.u32.totalorder %s342_s10, %s433_s2 }
  0x77   :  { %p348_p9 = pnand %p346_p8, %p343_p7 }
  0x79   :  { %351 = shalt.err (!%p348_p9)
}
  0x7a   :  { %257 = dma.vmem_to_hbm [thread:$0]  %s255_s6, 64, %s433_s2, [#allocation4]  }
  0x7b   :  { %356 = dma.done.wait [#allocation4], 64  }
  0x7c   :  { %357 = vsyncadd [#allocation4], 4294967232 }
  0x7d   :  { %261 = vsyncpa [#allocation3], 1 }
  0x7e   :  { %262 = vsyncpa [#allocation6], 1 }
  0x7f   :  { %263 = vsyncpa [#allocation4], 1 }

</bundles_post_ra>
